<compile_context>
chip_gen: v5e
topology: v5e:2x2
jax: 0.10.0
libtpu: 0.0.40
codegen_flags: <defaults>
</compile_context>

<pallas_src>
import functools

import jax
import jax.numpy as jnp
from jax import lax
from jax.experimental import pallas as pl
from jax.experimental.pallas import tpu as pltpu

_MiB = 1024 * 1024


def _round_up(x: int, m: int) -> int:
    return ((x + m - 1) // m) * m


def _sublane(dtype) -> int:
    # Minimum sublane multiple per dtype: 8 (4-byte) / 16 (2-byte) / 32 (1-byte).
    return max(8, 32 // jnp.dtype(dtype).itemsize)


def _pick_divisor(padded: int, align: int, max_tile: int) -> int:
    """Largest multiple of `align` that is <= max_tile and divides `padded`."""
    t = max(align, (min(max_tile, padded) // align) * align)
    while padded % t:
        t -= align
    return t


@functools.lru_cache(maxsize=1)
def _physical_vmem_bytes() -> int:
    try:
        return int(pltpu.get_tpu_info().vmem_capacity_bytes)
    except Exception:
        return 64 * _MiB  # conservative fallback: v7x per-TensorCore VMEM


def masked_linear_kernel(x_ref, w_ref, m_ref, b_ref, o_ref, acc_ref):
    # Zero the f32 accumulator at the start of every K sweep.
    @pl.when(pl.program_id(2) == 0)
    def _():
        acc_ref[...] = jnp.zeros_like(acc_ref)

    # Apply the mask on the VPU, then contract the shared last (D_in) dim of
    # x (tm, tk) and masked weight (tn, tk) on the MXU.  The transposed-RHS
    # contraction is consumed natively by the MXU (no materialized transpose).
    w_masked = w_ref[...] * m_ref[...].astype(w_ref.dtype)
    acc_ref[...] += lax.dot_general(
        x_ref[...], w_masked,
        dimension_numbers=(((1,), (1,)), ((), ())),
        preferred_element_type=jnp.float32,
    )

    # Finalize: add the bias exactly once, cast, store (lane-dense tn >= 128).
    @pl.when(pl.program_id(2) == pl.num_programs(2) - 1)
    def _():
        o_ref[...] = (acc_ref[...] + b_ref[...].astype(jnp.float32)).astype(o_ref.dtype)


@functools.partial(jax.jit, static_argnames=("tm_max", "tn_max", "tk_max"))
def masked_linear_pallas(x, weight, mask, bias, *, tm_max=512, tn_max=512, tk_max=4096):
    """x: (B, D_in), weight/mask: (D_out, D_in), bias: (D_out,) -> (B, D_out)."""
    B, D_in = x.shape
    D_out, _ = weight.shape

    # Binary (bool/int) masks travel as int8 (4x less HBM traffic); float masks
    # keep their exact values (no silent truncation of fractional entries).
    if mask.dtype == jnp.bool_ or jnp.issubdtype(mask.dtype, jnp.integer):
        mask = mask.astype(jnp.int8)
    else:
        mask = mask.astype(weight.dtype)

    x_b = jnp.dtype(x.dtype).itemsize
    w_b = jnp.dtype(weight.dtype).itemsize
    m_b = jnp.dtype(mask.dtype).itemsize
    o_b = x_b  # output follows the activation dtype

    # ---- tile selection ------------------------------------------------------
    # Lane (last) block dims must be multiples of 128; sublane dims per dtype.
    tm_align = _sublane(x.dtype)
    Dop = _round_up(D_out, 128)
    Dip = _round_up(D_in, 128)

    tm = max(tm_align, (min(tm_max, _round_up(B, tm_align)) // tm_align) * tm_align)
    tn = _pick_divisor(Dop, 128, tn_max)
    tk = _pick_divisor(Dip, 128, tk_max)

    # Keep the double-buffered working set under ~half of physical VMEM
    # (v7x: 64 MiB -> ~32 MiB budget; v5e/v6e: 128 MiB -> ~56 MiB budget).
    phys = _physical_vmem_bytes()
    budget = min(phys // 2, 56 * _MiB)

    def working_set(tm_, tn_, tk_):
        return (2 * tm_ * tk_ * x_b        # x tile (double-buffered)
                + 2 * tn_ * tk_ * w_b      # weight tile
                + 2 * tn_ * tk_ * m_b      # mask tile
                + 2 * tm_ * tn_ * o_b      # output tile
                + 2 * tn_ * 4              # bias row
                + tm_ * tn_ * 4)           # f32 accumulator

    while working_set(tm, tn, tk) > budget:
        if tk > 512:
            tk = _pick_divisor(Dip, 128, max(128, tk // 2))
        elif tn > 128:
            tn = _pick_divisor(Dop, 128, max(128, tn // 2))
        elif tm > tm_align:
            tm = max(tm_align, ((tm // 2) // tm_align) * tm_align)
        else:
            break

    Bp = _round_up(B, tm)

    # v7x has two TensorCores: expose >= 2 blocks along the parallel axes.
    if (Bp // tm) * (Dop // tn) < 2 and tn >= 256:
        tn = _pick_divisor(Dop, 128, tn // 2)

    # ---- padding (only when genuinely ragged; aligned dims pay nothing) ------
    xp = x if (Bp == B and Dip == D_in) else jnp.pad(x, ((0, Bp - B), (0, Dip - D_in)))
    wp = weight if (Dop == D_out and Dip == D_in) else jnp.pad(
        weight, ((0, Dop - D_out), (0, Dip - D_in)))
    mp = mask if (Dop == D_out and Dip == D_in) else jnp.pad(
        mask, ((0, Dop - D_out), (0, Dip - D_in)))
    bp = (bias if Dop == D_out else jnp.pad(bias, (0, Dop - D_out))).reshape(1, Dop)

    grid = (Bp // tm, Dop // tn, Dip // tk)
    vmem_limit = int(min(phys - 8 * _MiB,
                         max(32 * _MiB, working_set(tm, tn, tk) + 16 * _MiB)))

    out = pl.pallas_call(
        masked_linear_kernel,
        out_shape=jax.ShapeDtypeStruct((Bp, Dop), x.dtype),
        grid_spec=pltpu.PrefetchScalarGridSpec(
            num_scalar_prefetch=0,
            grid=grid,
            in_specs=[
                pl.BlockSpec((tm, tk), lambda i, j, k: (i, k)),   # x
                pl.BlockSpec((tn, tk), lambda i, j, k: (j, k)),   # weight
                pl.BlockSpec((tn, tk), lambda i, j, k: (j, k)),   # mask
                pl.BlockSpec((1, tn), lambda i, j, k: (0, j)),    # bias
            ],
            out_specs=pl.BlockSpec((tm, tn), lambda i, j, k: (i, j)),
            scratch_shapes=[pltpu.VMEM((tm, tn), jnp.float32)],   # f32 accumulator
        ),
        compiler_params=pltpu.CompilerParams(
            dimension_semantics=("parallel", "parallel", "arbitrary"),
            vmem_limit_bytes=vmem_limit,
        ),
    )(xp, wp, mp, bp)

    if Bp != B or Dop != D_out:
        out = out[:B, :D_out]
    return out


def masked_linear(x, weight, mask, bias, *, force_pallas=False):
    """Dispatch: tiny layers are cheaper fused by XLA than via pallas_call."""
    B, D_in = x.shape
    D_out = weight.shape[0]
    if not force_pallas and B * D_in * D_out < (1 << 21):
        return x @ (weight * mask.astype(weight.dtype)).T + bias
    return masked_linear_pallas(x, weight, mask, bias)


if __name__ == "__main__":
    key = jax.random.PRNGKey(0)
    k_x, k_w, k_b, k_m = jax.random.split(key, 4)

    # Module-sized shapes: batch=8, input_dim=32, output_dim=16 (Pallas forced on).
    B, D_in, D_out = 8, 32, 16
    x = jax.random.normal(k_x, (B, D_in), dtype=jnp.float32)
    bound = 1.0 / jnp.sqrt(jnp.float32(D_in))   # nn.Linear default init range
    weight = jax.random.uniform(k_w, (D_out, D_in), minval=-bound, maxval=bound,
                                dtype=jnp.float32)
    bias = jax.random.uniform(k_b, (D_out,), minval=-bound, maxval=bound,
                              dtype=jnp.float32)
    mask = jax.random.uniform(k_m, (D_out, D_in)) > 0.5   # binary mask (set_mask())

    out = jax.block_until_ready(masked_linear(x, weight, mask, bias, force_pallas=True))
    ref = x @ (weight * mask.astype(jnp.float32)).T + bias
    assert out.shape == (B, D_out)
    assert jnp.allclose(out, ref, atol=1e-5, rtol=1e-5)

    # Multi-tile check: forced-small tiles exercise K accumulation, bias added
    # exactly once, parallel i/j tiling, and the no-pad path (128-aligned dims).
    B2, Di2, Do2 = 64, 1024, 384
    x2 = jax.random.normal(k_x, (B2, Di2), dtype=jnp.float32)
    w2 = jax.random.normal(k_w, (Do2, Di2), dtype=jnp.float32) * 0.02
    b2 = jax.random.normal(k_b, (Do2,), dtype=jnp.float32) * 0.02
    m2 = (jax.random.uniform(k_m, (Do2, Di2)) > 0.5).astype(jnp.int8)
    out2 = jax.block_until_ready(
        masked_linear_pallas(x2, w2, m2, b2, tm_max=32, tn_max=128, tk_max=256))
    ref2 = x2 @ (w2 * m2.astype(jnp.float32)).T + b2
    assert out2.shape == (B2, Do2)
    assert jnp.allclose(out2, ref2, atol=1e-3, rtol=1e-3)

    # Default large-tile path (VMEM-budgeted tiles, dual-TC tn split when needed).
    B3, Di3, Do3 = 256, 2048, 512
    x3 = jax.random.normal(k_x, (B3, Di3), dtype=jnp.float32) * 0.05
    w3 = jax.random.normal(k_w, (Do3, Di3), dtype=jnp.float32) * 0.02
    b3 = jax.random.normal(k_b, (Do3,), dtype=jnp.float32) * 0.02
    m3 = jax.random.uniform(k_m, (Do3, Di3)) > 0.5
    out3 = jax.block_until_ready(masked_linear_pallas(x3, w3, m3, b3))
    ref3 = x3 @ (w3 * m3.astype(jnp.float32)).T + b3
    assert out3.shape == (B3, Do3)
    assert jnp.allclose(out3, ref3, atol=2e-3, rtol=2e-3)

    print("KERNEL_OK")
</pallas_src>

<mosaic_0001>
module attributes {stable_mosaic.version = 11 : i64} {
  func.func @masked_linear_kernel(%arg0: i32, %arg1: i32, %arg2: i32, %arg3: memref<8x128xf32, #tpu.memory_space<vmem>>, %arg4: memref<128x128xf32, #tpu.memory_space<vmem>>, %arg5: memref<128x128xi8, #tpu.memory_space<vmem>>, %arg6: memref<1x128xf32, #tpu.memory_space<vmem>>, %arg7: memref<8x128xf32, #tpu.memory_space<vmem>>, %arg8: memref<8x128xf32, #tpu.memory_space<vmem>>) attributes {dimension_semantics = [#tpu.dimension_semantics<parallel>, #tpu.dimension_semantics<parallel>, #tpu.dimension_semantics<arbitrary>], iteration_bounds = array<i64: 1, 1, 1>, scalar_prefetch = 0 : i64, scratch_operands = 1 : i64, tpu.core_type = #tpu.core_type<tc>, window_params = [{transform_indices = @transform_0, window_bounds = array<i64: 8, 128>}, {transform_indices = @transform_1, window_bounds = array<i64: 128, 128>}, {transform_indices = @transform_2, window_bounds = array<i64: 128, 128>}, {transform_indices = @transform_3, window_bounds = array<i64: 1, 128>}, {transform_indices = @transform_4, window_bounds = array<i64: 8, 128>}]} {
    %c0_i32 = arith.constant 0 : i32
    %0 = arith.cmpi eq, %arg2, %c0_i32 : i32
    %1 = arith.extui %0 : i1 to i32
    %c0_i32_0 = arith.constant 0 : i32
    %2 = arith.cmpi ne, %1, %c0_i32_0 : i32
    scf.if %2 {
      %cst_12 = arith.constant 0.000000e+00 : f32
      %15 = vector.broadcast %cst_12 : f32 to vector<8x128xf32>
      %c0_13 = arith.constant 0 : index
      %c0_14 = arith.constant 0 : index
      %16 = vector.load %arg8[%c0_13, %c0_14] : memref<8x128xf32, #tpu.memory_space<vmem>>, vector<8x128xf32>
      tpu.vector_store %arg8[%c0_13, %c0_14], %15 {strides = array<i32>} : memref<8x128xf32, #tpu.memory_space<vmem>>, vector<8x128xf32>,
    } else {
    }
    %c0 = arith.constant 0 : index
    %c0_1 = arith.constant 0 : index
    %3 = vector.load %arg4[%c0, %c0_1] : memref<128x128xf32, #tpu.memory_space<vmem>>, vector<128x128xf32>
    %c0_2 = arith.constant 0 : index
    %c0_3 = arith.constant 0 : index
    %4 = vector.load %arg5[%c0_2, %c0_3] : memref<128x128xi8, #tpu.memory_space<vmem>>, vector<128x128xi8>
    %5 = arith.sitofp %4 : vector<128x128xi8> to vector<128x128xf32>
    %6 = arith.mulf %3, %5 : vector<128x128xf32>
    %c0_4 = arith.constant 0 : index
    %c0_5 = arith.constant 0 : index
    %7 = vector.load %arg8[%c0_4, %c0_5] : memref<8x128xf32, #tpu.memory_space<vmem>>, vector<8x128xf32>
    %c0_6 = arith.constant 0 : index
    %c0_7 = arith.constant 0 : index
    %8 = vector.load %arg3[%c0_6, %c0_7] : memref<8x128xf32, #tpu.memory_space<vmem>>, vector<8x128xf32>
    %cst = arith.constant dense<0.000000e+00> : vector<8x128xf32>
    %9 = tpu.matmul %8, %6, %cst {dimension_numbers = #tpu.dot_dimension_numbers<[1], [1], [0], [0], [0, 0, 1, 0], [], []>} : vector<8x128xf32>, vector<128x128xf32>, vector<8x128xf32> -> vector<8x128xf32>
    %10 = arith.addf %7, %9 : vector<8x128xf32>
    %c0_8 = arith.constant 0 : index
    %c0_9 = arith.constant 0 : index
    %11 = vector.load %arg8[%c0_8, %c0_9] : memref<8x128xf32, #tpu.memory_space<vmem>>, vector<8x128xf32>
    tpu.vector_store %arg8[%c0_8, %c0_9], %10 {strides = array<i32>} : memref<8x128xf32, #tpu.memory_space<vmem>>, vector<8x128xf32>,
    %c0_i32_10 = arith.constant 0 : i32
    %12 = arith.cmpi eq, %arg2, %c0_i32_10 : i32
    %13 = arith.extui %12 : i1 to i32
    %c0_i32_11 = arith.constant 0 : i32
    %14 = arith.cmpi ne, %13, %c0_i32_11 : i32
    scf.if %14 {
      %c0_12 = arith.constant 0 : index
      %c0_13 = arith.constant 0 : index
      %15 = vector.load %arg8[%c0_12, %c0_13] : memref<8x128xf32, #tpu.memory_space<vmem>>, vector<8x128xf32>
      %c0_14 = arith.constant 0 : index
      %c0_15 = arith.constant 0 : index
      %16 = vector.load %arg6[%c0_14, %c0_15] : memref<1x128xf32, #tpu.memory_space<vmem>>, vector<1x128xf32>
      %17 = vector.broadcast %16 : vector<1x128xf32> to vector<8x128xf32>
      %18 = arith.addf %15, %17 : vector<8x128xf32>
      %c0_16 = arith.constant 0 : index
      %c0_17 = arith.constant 0 : index
      %19 = vector.load %arg7[%c0_16, %c0_17] : memref<8x128xf32, #tpu.memory_space<vmem>>, vector<8x128xf32>
      tpu.vector_store %arg7[%c0_16, %c0_17], %18 {strides = array<i32>} : memref<8x128xf32, #tpu.memory_space<vmem>>, vector<8x128xf32>,
    } else {
    }
    return
  }
  func.func @transform_0(%arg0: i32, %arg1: i32, %arg2: i32) -> (i32, i32) {
    %c0_i32 = arith.constant 0 : i32
    return %arg0, %arg2 : i32, i32
  }
  func.func @transform_1(%arg0: i32, %arg1: i32, %arg2: i32) -> (i32, i32) {
    %c0_i32 = arith.constant 0 : i32
    return %arg1, %arg2 : i32, i32
  }
  func.func @transform_2(%arg0: i32, %arg1: i32, %arg2: i32) -> (i32, i32) {
    %c0_i32 = arith.constant 0 : i32
    return %arg1, %arg2 : i32, i32
  }
  func.func @transform_3(%arg0: i32, %arg1: i32, %arg2: i32) -> (i32, i32) {
    %c0_i32 = arith.constant 0 : i32
    %c0_i32_0 = arith.constant 0 : i32
    return %c0_i32, %arg1 : i32, i32
  }
  func.func @transform_4(%arg0: i32, %arg1: i32, %arg2: i32) -> (i32, i32) {
    %c0_i32 = arith.constant 0 : i32
    return %arg0, %arg1 : i32, i32
  }
}

</mosaic_0001>

<bundles_post_ra>
// kernel: masked_linear_pallas.1
= control target key start
LH: loop header
LB: loop body
LE: loop exit
PB: predicated region body
PF: predicated region fallthrough
CT: control target
= control target key end

     0   :  { %s264_s0 = inlined_call_operand.vmem [shape: f32[8,128], index: 0, kind: input, shape index: {}]   ;;  %s265_s1 = inlined_call_operand.vmem [shape: f32[128,128], index: 1, kind: input, shape index: {}]   ;;  %s266_s2 = inlined_call_operand.vmem [shape: s8[128,128], index: 2, kind: input, shape index: {}]   ;;  %s267_s3 = inlined_call_operand.vmem [shape: f32[1,128], index: 3, kind: input, shape index: {}]   ;;  %s268_s4 = inlined_call_operand.hbm [shape: f32[8,128], index: 4, kind: output, shape index: {}]  }
   0x1   :  { %v42_v0 = vld [vmem:[%s266_s2 + $0x18] sm:$0xff]  ;;  %v37_v7 = vld [vmem:[%s265_s1 + $0x70] sm:$0xff] }
   0x2   :  { %v58_v1 = vunpack.c.3.s8 %v42_v0  ;;  %v57_v2 = vunpack.c.2.s8 %v42_v0  ;;  %v38_v3 = vld [vmem:[%s265_s1 + $0x78] sm:$0xff]  ;;  %v56_v6 = vunpack.c.1.s8 %v42_v0 }
   0x4   :  { %v74_v4 = vcvt.s32.f32 %v58_v1  ;;  %v73_v5 = vcvt.s32.f32 %v57_v2 }
   0x5   :  { %9 = vsyncpa [#allocation4], 0  ;;  %v72_v10 = vcvt.s32.f32 %v56_v6  ;;  %v55_v11 = vunpack.c.0.s8 %v42_v0  ;;  %v36_v12 = vld [vmem:[%s265_s1 + $0x68] sm:$0xff]  ;;  %v41_v13 = vld [vmem:[%s266_s2 + $0x10] sm:$0xff]  ;;  %s169_s6 = smov [#allocation3]   ;;  %s132_s10 = sshll.u32 %s268_s4, 4  ;;  %s133_s10 = int_to_ptr.hbm [resolvable:$true] %s132_s10 }
   0x6   :  { %v90_v8 = vmul.f32 %v74_v4, %v38_v3  ;;  %v89_v9 = vmul.f32 %v73_v5, %v37_v7  ;;  %v54_v16 = vunpack.c.3.s8 %v41_v13  ;;  %v35_v17 = vld [vmem:[%s265_s1 + $0x60] sm:$0xff]  ;;  %v53_v20 = vunpack.c.2.s8 %v41_v13  ;;  %v34_v21 = vld [vmem:[%s265_s1 + $0x58] sm:$0xff]  ;;  %v33_v25 = vld [vmem:[%s265_s1 + $0x50] sm:$0xff]  ;;  %s130_s7 = sshll.u32 %s169_s6, 4  ;;  %s131_s7 = int_to_ptr.vmem [resolvable:$true] %s130_s7 }
   0x7   :  { %v88_v14 = vmul.f32 %v72_v10, %v36_v12  ;;  %v71_v15 = vcvt.s32.f32 %v55_v11  ;;  %v52_v24 = vunpack.c.1.s8 %v41_v13  ;;  %v51_v28 = vunpack.c.0.s8 %v41_v13  ;;  %v32_v29 = vld [vmem:[%s265_s1 + $0x48] sm:$0xff]  ;;  %v31_v34 = vld [vmem:[%s265_s1 + $0x40] sm:$0xff]  ;;  %v30_v38 = vld [vmem:[%s265_s1 + $0x38] sm:$0xff] }
   0x8   :  { %93 = vmatpush.xpose.msra.mxu0 %v90_v8  ;;  %v70_v19 = vcvt.s32.f32 %v54_v16  ;;  %v69_v23 = vcvt.s32.f32 %v53_v20  ;;  %v40_v30 = vld [vmem:[%s266_s2 + $0x8] sm:$0xff]  ;;  %v29_v42 = vld [vmem:[%s265_s1 + $0x30] sm:$0xff]  ;;  %v39_v47 = vld [vmem:[%s266_s2] sm:$0xff] }
   0x9   :  { %v87_v18 = vmul.f32 %v71_v15, %v35_v17  ;;  %v68_v27 = vcvt.s32.f32 %v52_v24  ;;  %v67_v32 = vcvt.s32.f32 %v51_v28  ;;  %v50_v33 = vunpack.c.3.s8 %v40_v30  ;;  %v28_v46 = vld [vmem:[%s265_s1 + $0x28] sm:$0xff]  ;;  %v27_v51 = vld [vmem:[%s265_s1 + $0x20] sm:$0xff]  ;;  %v26_v55 = vld [vmem:[%s265_s1 + $0x18] sm:$0xff] }
   0xa   :  { %v86_v22 = vmul.f32 %v70_v19, %v34_v21  ;;  %v85_v26 = vmul.f32 %v69_v23, %v33_v25  ;;  %v49_v37 = vunpack.c.2.s8 %v40_v30  ;;  %v48_v41 = vunpack.c.1.s8 %v40_v30  ;;  %v25_v59 = vld [vmem:[%s265_s1 + $0x10] sm:$0xff]  ;;  %v24_v63 = vld [vmem:[%s265_s1 + $0x8] sm:$0xff]  ;;  %v23_v2 = vld [vmem:[%s265_s1] sm:$0xff] }
   0xb   :  { %v84_v31 = vmul.f32 %v68_v27, %v32_v29  ;;  %v83_v35 = vmul.f32 %v67_v32, %v31_v34  ;;  %v66_v36 = vcvt.s32.f32 %v50_v33  ;;  %v47_v45 = vunpack.c.0.s8 %v40_v30  ;;  %v92_v4 = vld [vmem:[%s264_s0] sm:$0xff] }
   0xc   :  { %94 = vmatpush.xpose.msra.mxu0 %v89_v9  ;;  %v65_v40 = vcvt.s32.f32 %v49_v37  ;;  %v64_v44 = vcvt.s32.f32 %v48_v41  ;;  %v46_v50 = vunpack.c.3.s8 %v39_v47  ;;  %v45_v54 = vunpack.c.2.s8 %v39_v47  ;;  %v142_v5 = vld [vmem:[%s267_s3] ss:$0 sm:$0xff] }
   0xd   :  { %v82_v39 = vmul.f32 %v66_v36, %v30_v38  ;;  %v63_v49 = vcvt.s32.f32 %v47_v45  ;;  %v44_v58 = vunpack.c.1.s8 %v39_v47  ;;  %v43_v62 = vunpack.c.0.s8 %v39_v47 }
   0xe   :  { %v81_v43 = vmul.f32 %v65_v40, %v29_v42  ;;  %v80_v48 = vmul.f32 %v64_v44, %v28_v46  ;;  %v62_v53 = vcvt.s32.f32 %v46_v50  ;;  %v61_v57 = vcvt.s32.f32 %v45_v54 }
   0xf   :  { %v79_v52 = vmul.f32 %v63_v49, %v27_v51  ;;  %v60_v61 = vcvt.s32.f32 %v44_v58  ;;  %v59_v1 = vcvt.s32.f32 %v43_v62 }
  0x10   :  { %95 = vmatpush.xpose.msra.mxu0 %v88_v14  ;;  %v78_v56 = vmul.f32 %v62_v53, %v26_v55  ;;  %v77_v60 = vmul.f32 %v61_v57, %v25_v59 }
  0x11   :  { %v76_v0 = vmul.f32 %v60_v61, %v24_v63  ;;  %v75_v3 = vmul.f32 %v59_v1, %v23_v2 }
  0x14   :  { %96 = vmatpush.xpose.msra.mxu0 %v87_v18 }
  0x18   :  { %97 = vmatpush.xpose.msra.mxu0 %v86_v22 }
  0x1c   :  { %98 = vmatpush.xpose.msra.mxu0 %v85_v26 }
  0x20   :  { %99 = vmatpush.xpose.msra.mxu0 %v84_v31 }
  0x24   :  { %100 = vmatpush.xpose.msra.mxu0 %v83_v35 }
  0x28   :  { %101 = vmatpush.xpose.msra.mxu0 %v82_v39 }
  0x2c   :  { %102 = vmatpush.xpose.msra.mxu0 %v81_v43 }
  0x30   :  { %103 = vmatpush.xpose.msra.mxu0 %v80_v48 }
  0x34   :  { %104 = vmatpush.xpose.msra.mxu0 %v79_v52 }
  0x38   :  { %105 = vmatpush.xpose.msra.mxu0 %v78_v56 }
  0x3c   :  { %106 = vmatpush.xpose.msra.mxu0 %v77_v60 }
  0x40   :  { %107 = vmatpush.xpose.msra.mxu0 %v76_v0 }
  0x44   :  { %108 = vmatpush.xpose.msra.mxu0 %v75_v3 }
  0x47   :  { %109 = vmatmul.f32.vlgmr.msra.gmra.mxu0 %v92_v4 }
  0xc4   :  { %v110_v6 = vpop.f32.mrf.mxu0 }
  0xc5   :  { %v123_v7 = vadd.f32 %v142_v5, %v110_v6 }
  0xc7   :  { %124 = vst [vmem:[#allocation3] sm:$0xff] %v123_v7 }
  0xc8   :  { %135 = dma.vmem_to_hbm [thread:$0]  %s131_s7, 128, %s133_s10, [#allocation4]  }
  0xc9   :  { %167 = dma.done.wait [#allocation4], 128  }
  0xca   :  { %168 = vsyncadd [#allocation4], 4294967168 }
  0xcb   :  { %140 = vsyncpa [#allocation4], 1 }

</bundles_post_ra>
